<compile_context>
chip_gen: v5e
topology: v5e:2x2
jax: 0.10.0
libtpu: 0.0.40
codegen_flags: <defaults>
</compile_context>

<pallas_src>
import functools

import jax
import jax.numpy as jnp
from jax.experimental import pallas as pl
from jax.experimental.pallas import tpu as pltpu


# ---------------------------------------------------------------------------
# Per-generation VMEM / block budgets
# ---------------------------------------------------------------------------
@functools.lru_cache(maxsize=1)
def _vmem_capacity_bytes():
    try:
        info = pltpu.get_tpu_info()
        cap = getattr(info, "vmem_capacity_bytes", None)
        if cap:
            return int(cap)
    except Exception:
        pass
    return 64 * 1024 * 1024  # conservative (v7x-sized) fallback


@functools.lru_cache(maxsize=8)
def _budgets(itemsize):
    """Returns (scoped_vmem_limit_bytes, per_array_block_byte_cap)."""
    cap = _vmem_capacity_bytes()
    if cap >= 96 * 1024 * 1024:          # v5e / v6e: 128 MiB physical VMEM
        scoped = 64 * 1024 * 1024
        block_cap = 6 * 1024 * 1024
    else:                                 # v7x: 64 MiB physical VMEM
        scoped = 48 * 1024 * 1024
        block_cap = 4 * 1024 * 1024
    # Live VMEM per step ~= 2*(x + y + out) blocks at input dtype + one f32 z temporary.
    # Clamp the block cap so the pipeline fits the scoped limit with headroom.
    per_block_live = 6.0 + 4.0 / float(itemsize)
    block_cap = min(block_cap, int(scoped * 0.85 / per_block_live))
    return scoped, block_cap


def _compiler_params(dimension_semantics, vmem_limit_bytes):
    return pltpu.CompilerParams(
        dimension_semantics=dimension_semantics,
        vmem_limit_bytes=vmem_limit_bytes,
    )


# ---------------------------------------------------------------------------
# Kernels
# ---------------------------------------------------------------------------
def _add_norm_rows_kernel(x_ref, y_ref, w_ref, b_ref, o_ref, *, eps, inv_d):
    """Per-row LayerNorm over the last dim.  x/y/o: (TILE_R, D); w/b: (1, D)."""
    z = x_ref[...].astype(jnp.float32) + y_ref[...].astype(jnp.float32)
    mean = jnp.sum(z, axis=-1, keepdims=True) * inv_d
    zc = z - mean
    var = jnp.sum(zc * zc, axis=-1, keepdims=True) * inv_d   # biased (matches torch)
    rstd = jax.lax.rsqrt(var + eps)
    w = w_ref[...].astype(jnp.float32)
    b = b_ref[...].astype(jnp.float32)
    o_ref[...] = (zc * rstd * w + b).astype(o_ref.dtype)


def _add_norm_full_slab_kernel(x_ref, y_ref, w_ref, b_ref, o_ref, *, eps, inv_n):
    """LayerNorm over the whole (Q, D) slab of one batch element (batch dim squeezed)."""
    z = x_ref[...].astype(jnp.float32) + y_ref[...].astype(jnp.float32)
    mean = jnp.sum(z, keepdims=True) * inv_n                  # (1, 1)
    zc = z - mean
    var = jnp.sum(zc * zc, keepdims=True) * inv_n             # biased (matches torch)
    rstd = jax.lax.rsqrt(var + eps)
    w = w_ref[...].astype(jnp.float32)
    b = b_ref[...].astype(jnp.float32)
    o_ref[...] = (zc * rstd * w + b).astype(o_ref.dtype)


def _add_norm_full_stash_kernel(x_ref, y_ref, w_ref, b_ref, o_ref,
                                z_stash, sum_ref, ssq_ref, *, eps, inv_n, tile_q):
    """Q-tiled three-pass full LayerNorm with the f32 z slab stashed in VMEM.

    Grid: (bs, 3, n_qt).  Axis 1 is the pass:
      pass 0: z = x + y from HBM tiles; stash z; accumulate sum.
      pass 1: accumulate centered sum-of-squares from the stash.
      pass 2: normalize each tile from the stash (x/y are NOT re-read from HBM).
    """
    p = pl.program_id(1)
    qt = pl.program_id(2)
    row0 = pl.multiple_of(qt * tile_q, 8)

    @pl.when(jnp.logical_and(p == 0, qt == 0))
    def _init():
        sum_ref[...] = jnp.zeros_like(sum_ref)
        ssq_ref[...] = jnp.zeros_like(ssq_ref)

    @pl.when(p == 0)
    def _sum_and_stash():
        z = x_ref[...].astype(jnp.float32) + y_ref[...].astype(jnp.float32)
        z_stash[pl.ds(row0, tile_q), :] = z
        sum_ref[...] += jnp.sum(z, keepdims=True)

    @pl.when(p == 1)
    def _centered_ssq():
        mean = sum_ref[...] * inv_n
        zc = z_stash[pl.ds(row0, tile_q), :] - mean
        ssq_ref[...] += jnp.sum(zc * zc, keepdims=True)

    @pl.when(p == 2)
    def _normalize():
        mean = sum_ref[...] * inv_n
        var = ssq_ref[...] * inv_n                            # biased (matches torch)
        rstd = jax.lax.rsqrt(var + eps)
        w = w_ref[...].astype(jnp.float32)
        b = b_ref[...].astype(jnp.float32)
        zc = z_stash[pl.ds(row0, tile_q), :] - mean
        o_ref[...] = (zc * rstd * w + b).astype(o_ref.dtype)


def _add_norm_full_reread_kernel(x_ref, y_ref, w_ref, b_ref, o_ref,
                                 sum_ref, ssq_ref, *, eps, inv_n):
    """Q-tiled two-pass full LayerNorm that re-reads x/y in pass 1 (huge-slab fallback).

    Grid: (bs, 2, n_qt).  Uses sum / sum-of-squares (slight cancellation risk for
    inputs with |mean| >> std); only used when the f32 z slab does not fit VMEM.
    """
    p = pl.program_id(1)
    qt = pl.program_id(2)
    z = x_ref[...].astype(jnp.float32) + y_ref[...].astype(jnp.float32)

    @pl.when(jnp.logical_and(p == 0, qt == 0))
    def _init():
        sum_ref[...] = jnp.zeros_like(sum_ref)
        ssq_ref[...] = jnp.zeros_like(ssq_ref)

    @pl.when(p == 0)
    def _accumulate():
        sum_ref[...] += jnp.sum(z, keepdims=True)
        ssq_ref[...] += jnp.sum(z * z, keepdims=True)

    @pl.when(p == 1)
    def _normalize():
        mean = sum_ref[...] * inv_n
        var = ssq_ref[...] * inv_n - mean * mean              # biased (matches torch)
        rstd = jax.lax.rsqrt(var + eps)
        w = w_ref[...].astype(jnp.float32)
        b = b_ref[...].astype(jnp.float32)
        o_ref[...] = ((z - mean) * rstd * w + b).astype(o_ref.dtype)


# ---------------------------------------------------------------------------
# Tiling helpers
# ---------------------------------------------------------------------------
def _row_tile(rows, bytes_per_row, block_cap):
    """Largest multiple-of-8 row tile within the per-array block byte budget."""
    if rows <= 8:
        return rows
    cap = min(rows, max(8, block_cap // max(bytes_per_row, 1)))
    return max(8, (cap // 8) * 8)


def _full_q_tile(Q, D, block_cap, itemsize):
    """Multiple-of-8 Q tile dividing Q exactly within the block byte budget (or None)."""
    if Q % 8 != 0:
        return None
    cap = min(Q, max(8, block_cap // max(D * itemsize, 1)))
    cap = max(8, (cap // 8) * 8)
    best = None
    for t in range(8, cap + 1, 8):
        if Q % t == 0:
            best = t
    return best


def _ind_p0(p):
    """1 iff p == 0 (for p in {0, 1, 2}), as index-map integer arithmetic."""
    return (1 - p) * (2 - p) // 2


def _ind_p2(p):
    """1 iff p == 2 (for p in {0, 1, 2}), as index-map integer arithmetic."""
    return p * (p - 1) // 2


# ---------------------------------------------------------------------------
# Wrappers
# ---------------------------------------------------------------------------
def _add_and_norm_lastdim(x, y, weight, bias, eps):
    bs, Q, D = x.shape
    itemsize = x.dtype.itemsize
    scoped, block_cap = _budgets(itemsize)

    rows = bs * Q
    x2 = x.reshape(rows, D)
    y2 = y.reshape(rows, D)
    w2 = weight.reshape(1, D)
    b2 = bias.reshape(1, D)

    tile_r = _row_tile(rows, D * itemsize, block_cap)
    grid = (pl.cdiv(rows, tile_r),)

    xy_spec = pl.BlockSpec((tile_r, D), lambda r: (r, 0))
    wb_spec = pl.BlockSpec((1, D), lambda r: (0, 0))

    kernel = functools.partial(_add_norm_rows_kernel, eps=float(eps), inv_d=1.0 / D)
    out2 = pl.pallas_call(
        kernel,
        out_shape=jax.ShapeDtypeStruct((rows, D), x.dtype),
        grid_spec=pltpu.PrefetchScalarGridSpec(
            num_scalar_prefetch=0,
            grid=grid,
            in_specs=[xy_spec, xy_spec, wb_spec, wb_spec],
            out_specs=xy_spec,
        ),
        compiler_params=_compiler_params(("parallel",), scoped),
    )(x2, y2, w2, b2)
    return out2.reshape(bs, Q, D)


def _add_and_norm_full(x, y, weight, bias, eps, tile_q=None, force=None):
    bs, Q, D = x.shape
    itemsize = x.dtype.itemsize
    scoped, block_cap = _budgets(itemsize)

    inv_n = 1.0 / (Q * D)
    slab_in_bytes = Q * D * itemsize
    z_f32_bytes = Q * D * 4
    stash_fits = z_f32_bytes <= int(scoped * 0.6)

    mode = force
    if mode is None:
        if tile_q is None and slab_in_bytes <= block_cap:
            mode = "slab"
        else:
            mode = "stash" if stash_fits else "reread"

    if mode in ("stash", "reread"):
        if tile_q is None:
            tile_q = _full_q_tile(Q, D, block_cap, itemsize)
        if tile_q is None:
            # TODO(synk): Q not a multiple of 8 and slab too large for one block; fall
            # back to the whole-slab kernel (masked accumulation would be needed to tile
            # oddly-shaped Q).  This may exceed the VMEM budget for extreme shapes.
            mode = "slab"

    if mode == "slab":
        kernel = functools.partial(_add_norm_full_slab_kernel,
                                   eps=float(eps), inv_n=inv_n)
        xy_spec = pl.BlockSpec((pl.Squeezed(), Q, D), lambda b: (b, 0, 0))
        wb_spec = pl.BlockSpec((Q, D), lambda b: (0, 0))
        return pl.pallas_call(
            kernel,
            out_shape=jax.ShapeDtypeStruct((bs, Q, D), x.dtype),
            grid_spec=pltpu.PrefetchScalarGridSpec(
                num_scalar_prefetch=0,
                grid=(bs,),
                in_specs=[xy_spec, xy_spec, wb_spec, wb_spec],
                out_specs=xy_spec,
            ),
            compiler_params=_compiler_params(("parallel",), scoped),
        )(x, y, weight, bias)

    assert Q % tile_q == 0 and tile_q % 8 == 0
    n_qt = Q // tile_q

    if mode == "stash":
        kernel = functools.partial(_add_norm_full_stash_kernel,
                                   eps=float(eps), inv_n=inv_n, tile_q=tile_q)
        # x/y are only consumed in pass 0; park their block index at tile 0 afterwards.
        xy_spec = pl.BlockSpec((pl.Squeezed(), tile_q, D),
                               lambda b, p, qt: (b, qt * _ind_p0(p), 0))
        # w/b and the output are only touched in pass 2; parked at tile 0 otherwise so no
        # uninitialized output block is ever flushed.
        wb_spec = pl.BlockSpec((tile_q, D),
                               lambda b, p, qt: (qt * _ind_p2(p), 0))
        out_spec = pl.BlockSpec((pl.Squeezed(), tile_q, D),
                                lambda b, p, qt: (b, qt * _ind_p2(p), 0))
        return pl.pallas_call(
            kernel,
            out_shape=jax.ShapeDtypeStruct((bs, Q, D), x.dtype),
            grid_spec=pltpu.PrefetchScalarGridSpec(
                num_scalar_prefetch=0,
                grid=(bs, 3, n_qt),
                in_specs=[xy_spec, xy_spec, wb_spec, wb_spec],
                out_specs=out_spec,
                scratch_shapes=[pltpu.VMEM((Q, D), jnp.float32),
                                pltpu.VMEM((1, 1), jnp.float32),
                                pltpu.VMEM((1, 1), jnp.float32)],
            ),
            compiler_params=_compiler_params(("parallel", "arbitrary", "arbitrary"),
                                             scoped),
        )(x, y, weight, bias)

    # mode == "reread": huge-slab fallback, re-reads x/y in pass 1.
    kernel = functools.partial(_add_norm_full_reread_kernel,
                               eps=float(eps), inv_n=inv_n)
    xy_spec = pl.BlockSpec((pl.Squeezed(), tile_q, D),
                           lambda b, p, qt: (b, qt, 0))
    wb_spec = pl.BlockSpec((tile_q, D), lambda b, p, qt: (qt * p, 0))
    # Output parked at tile 0 during pass 0 (never written), walked during pass 1.
    out_spec = pl.BlockSpec((pl.Squeezed(), tile_q, D),
                            lambda b, p, qt: (b, qt * p, 0))
    return pl.pallas_call(
        kernel,
        out_shape=jax.ShapeDtypeStruct((bs, Q, D), x.dtype),
        grid_spec=pltpu.PrefetchScalarGridSpec(
            num_scalar_prefetch=0,
            grid=(bs, 2, n_qt),
            in_specs=[xy_spec, xy_spec, wb_spec, wb_spec],
            out_specs=out_spec,
            scratch_shapes=[pltpu.VMEM((1, 1), jnp.float32),
                            pltpu.VMEM((1, 1), jnp.float32)],
        ),
        compiler_params=_compiler_params(("parallel", "arbitrary", "arbitrary"),
                                         scoped),
    )(x, y, weight, bias)


def add_and_norm(x, y, weight, bias, *, num_query=None, eps=1e-5,
                 _full_tile_q=None, _full_force=None):
    """Pallas equivalent of AddAndNormLayer.forward.

    x, y: [bs, num_query, embed_dims]
    num_query given  -> weight/bias are [num_query, embed_dims]; LN over last two dims.
    num_query = None -> weight/bias are [embed_dims]; LN over the last dim only.
    `_full_tile_q` / `_full_force` are test-only overrides for the full-norm path.
    """
    bs, Q, D = x.shape
    assert y.shape == x.shape
    if num_query is not None:
        assert num_query == Q and weight.shape == (Q, D) and bias.shape == (Q, D)
        return _add_and_norm_full(x, y, weight, bias, eps,
                                  tile_q=_full_tile_q, force=_full_force)
    assert weight.shape == (D,) and bias.shape == (D,)
    return _add_and_norm_lastdim(x, y, weight, bias, eps)


# ---------------------------------------------------------------------------
# Plain-JAX reference (matches torch.nn.LayerNorm semantics)
# ---------------------------------------------------------------------------
def _ref(x, y, weight, bias, num_query=None, eps=1e-5):
    z = x + y
    axes = (-2, -1) if num_query is not None else (-1,)
    mean = jnp.mean(z, axis=axes, keepdims=True)
    var = jnp.mean((z - mean) ** 2, axis=axes, keepdims=True)
    return (z - mean) / jnp.sqrt(var + eps) * weight + bias


if __name__ == "__main__":
    key = jax.random.PRNGKey(0)
    keys = jax.random.split(key, 10)
    kx, ky, kw1, kb1, kw2, kb2, kx2, ky2, kw3, kb3 = keys

    # --- Mode 1: num_query given -> LayerNorm over [num_query, embed_dims] (slab) ---
    bs, Q, D = 2, 8, 32
    x = jax.random.normal(kx, (bs, Q, D), dtype=jnp.float32)
    y = jax.random.normal(ky, (bs, Q, D), dtype=jnp.float32)
    w_full = 1.0 + 0.1 * jax.random.normal(kw1, (Q, D), jnp.float32)
    b_full = 0.1 * jax.random.normal(kb1, (Q, D), jnp.float32)
    out = jax.block_until_ready(add_and_norm(x, y, w_full, b_full, num_query=Q))
    ref = _ref(x, y, w_full, b_full, num_query=Q)
    assert jnp.max(jnp.abs(out - ref)) < 1e-4, "full-norm (slab) mismatch"

    # --- Mode 2: num_query=None -> LayerNorm over embed_dims only -------------------
    w_last = 1.0 + 0.1 * jax.random.normal(kw2, (D,), jnp.float32)
    b_last = 0.1 * jax.random.normal(kb2, (D,), jnp.float32)
    out = jax.block_until_ready(add_and_norm(x, y, w_last, b_last, num_query=None))
    ref = _ref(x, y, w_last, b_last, num_query=None)
    assert jnp.max(jnp.abs(out - ref)) < 1e-4, "last-dim norm mismatch"

    # --- Forced z-stash three-pass full-norm path (lane-dense D) --------------------
    bs2, Q2, D2 = 2, 64, 128
    x2 = jax.random.normal(kx2, (bs2, Q2, D2), dtype=jnp.float32)
    y2 = jax.random.normal(ky2, (bs2, Q2, D2), dtype=jnp.float32)
    w2 = 1.0 + 0.1 * jax.random.normal(kw3, (Q2, D2), jnp.float32)
    b2 = 0.1 * jax.random.normal(kb3, (Q2, D2), jnp.float32)
    out = jax.block_until_ready(
        add_and_norm(x2, y2, w2, b2, num_query=Q2, _full_tile_q=8, _full_force="stash"))
    ref = _ref(x2, y2, w2, b2, num_query=Q2)
    assert jnp.max(jnp.abs(out - ref)) < 1e-4, "full-norm (stash) mismatch"

    # --- Forced re-read two-pass full-norm fallback ----------------------------------
    out = jax.block_until_ready(
        add_and_norm(x2, y2, w2, b2, num_query=Q2, _full_tile_q=8, _full_force="reread"))
    assert jnp.max(jnp.abs(out - ref)) < 1e-4, "full-norm (reread) mismatch"

    # --- Last-dim mode on the lane-dense shape as well -------------------------------
    w_last2 = 1.0 + 0.1 * jax.random.normal(kw2, (D2,), jnp.float32)
    b_last2 = 0.1 * jax.random.normal(kb2, (D2,), jnp.float32)
    out = jax.block_until_ready(add_and_norm(x2, y2, w_last2, b_last2, num_query=None))
    ref = _ref(x2, y2, w_last2, b_last2, num_query=None)
    assert jnp.max(jnp.abs(out - ref)) < 1e-4, "last-dim norm (multi-row) mismatch"

    print("KERNEL_OK")
</pallas_src>

<mosaic_0001>
module attributes {stable_mosaic.version = 11 : i64} {
  func.func @_add_norm_full_slab_kernel(%arg0: i32, %arg1: memref<1x8x32xf32, #tpu.memory_space<vmem>>, %arg2: memref<1x8x32xf32, #tpu.memory_space<vmem>>, %arg3: memref<8x32xf32, #tpu.memory_space<vmem>>, %arg4: memref<8x32xf32, #tpu.memory_space<vmem>>, %arg5: memref<1x8x32xf32, #tpu.memory_space<vmem>>) attributes {dimension_semantics = [#tpu.dimension_semantics<parallel>], iteration_bounds = array<i64: 2>, scalar_prefetch = 0 : i64, scratch_operands = 0 : i64, tpu.core_type = #tpu.core_type<tc>, window_params = [{transform_indices = @transform_0, window_bounds = array<i64: 1, 8, 32>}, {transform_indices = @transform_1, window_bounds = array<i64: 1, 8, 32>}, {pipeline_mode = #tpu.pipeline_mode<synchronous>, transform_indices = @transform_2, window_bounds = array<i64: 8, 32>}, {pipeline_mode = #tpu.pipeline_mode<synchronous>, transform_indices = @transform_3, window_bounds = array<i64: 8, 32>}, {transform_indices = @transform_4, window_bounds = array<i64: 1, 8, 32>}]} {
    %c0 = arith.constant 0 : index
    %c0_0 = arith.constant 0 : index
    %c0_1 = arith.constant 0 : index
    %0 = vector.load %arg1[%c0, %c0_0, %c0_1] : memref<1x8x32xf32, #tpu.memory_space<vmem>>, vector<1x8x32xf32>
    %1 = vector.shape_cast %0 : vector<1x8x32xf32> to vector<8x32xf32>
    %c0_2 = arith.constant 0 : index
    %c0_3 = arith.constant 0 : index
    %c0_4 = arith.constant 0 : index
    %2 = vector.load %arg2[%c0_2, %c0_3, %c0_4] : memref<1x8x32xf32, #tpu.memory_space<vmem>>, vector<1x8x32xf32>
    %3 = vector.shape_cast %2 : vector<1x8x32xf32> to vector<8x32xf32>
    %4 = arith.addf %1, %3 : vector<8x32xf32>
    %5 = vector.shape_cast %4 : vector<8x32xf32> to vector<1x8x32xf32>
    %cst = arith.constant dense<0.000000e+00> : vector<1xf32>
    %6 = vector.multi_reduction <add>, %5, %cst [1, 2] : vector<1x8x32xf32> to vector<1xf32>
    %7 = vector.shape_cast %6 : vector<1xf32> to vector<1x1x1xf32>
    %8 = vector.extract %7[0, 0, 0] : f32 from vector<1x1x1xf32>
    %9 = vector.broadcast %8 : f32 to vector<1x1xf32>
    %cst_5 = arith.constant 3.906250e-03 : f32
    %10 = vector.broadcast %cst_5 : f32 to vector<1x1xf32>
    %11 = arith.mulf %9, %10 : vector<1x1xf32>
    %12 = vector.broadcast %11 : vector<1x1xf32> to vector<8x32xf32>
    %13 = arith.subf %4, %12 : vector<8x32xf32>
    %14 = arith.mulf %13, %13 : vector<8x32xf32>
    %15 = vector.shape_cast %14 : vector<8x32xf32> to vector<1x8x32xf32>
    %cst_6 = arith.constant dense<0.000000e+00> : vector<1xf32>
    %16 = vector.multi_reduction <add>, %15, %cst_6 [1, 2] : vector<1x8x32xf32> to vector<1xf32>
    %17 = vector.shape_cast %16 : vector<1xf32> to vector<1x1x1xf32>
    %18 = vector.extract %17[0, 0, 0] : f32 from vector<1x1x1xf32>
    %19 = vector.broadcast %18 : f32 to vector<1x1xf32>
    %cst_7 = arith.constant 3.906250e-03 : f32
    %20 = vector.broadcast %cst_7 : f32 to vector<1x1xf32>
    %21 = arith.mulf %19, %20 : vector<1x1xf32>
    %cst_8 = arith.constant 9.99999974E-6 : f32
    %22 = vector.broadcast %cst_8 : f32 to vector<1x1xf32>
    %23 = arith.addf %21, %22 : vector<1x1xf32>
    %24 = math.rsqrt %23 : vector<1x1xf32>
    %c0_9 = arith.constant 0 : index
    %c0_10 = arith.constant 0 : index
    %25 = vector.load %arg3[%c0_9, %c0_10] : memref<8x32xf32, #tpu.memory_space<vmem>>, vector<8x32xf32>
    %c0_11 = arith.constant 0 : index
    %c0_12 = arith.constant 0 : index
    %26 = vector.load %arg4[%c0_11, %c0_12] : memref<8x32xf32, #tpu.memory_space<vmem>>, vector<8x32xf32>
    %27 = vector.broadcast %24 : vector<1x1xf32> to vector<8x32xf32>
    %28 = arith.mulf %13, %27 : vector<8x32xf32>
    %29 = arith.mulf %28, %25 : vector<8x32xf32>
    %30 = arith.addf %29, %26 : vector<8x32xf32>
    %c0_13 = arith.constant 0 : index
    %c0_14 = arith.constant 0 : index
    %c0_15 = arith.constant 0 : index
    %31 = vector.load %arg5[%c0_13, %c0_14, %c0_15] : memref<1x8x32xf32, #tpu.memory_space<vmem>>, vector<1x8x32xf32>
    %32 = vector.shape_cast %31 : vector<1x8x32xf32> to vector<8x32xf32>
    %33 = vector.shape_cast %30 : vector<8x32xf32> to vector<1x8x32xf32>
    tpu.vector_store %arg5[%c0_13, %c0_14, %c0_15], %33 {strides = array<i32>} : memref<1x8x32xf32, #tpu.memory_space<vmem>>, vector<1x8x32xf32>,
    return
  }
  func.func @transform_0(%arg0: i32) -> (i32, i32, i32) {
    %c0_i32 = arith.constant 0 : i32
    %c0_i32_0 = arith.constant 0 : i32
    %c0_i32_1 = arith.constant 0 : i32
    return %arg0, %c0_i32, %c0_i32_0 : i32, i32, i32
  }
  func.func @transform_1(%arg0: i32) -> (i32, i32, i32) {
    %c0_i32 = arith.constant 0 : i32
    %c0_i32_0 = arith.constant 0 : i32
    %c0_i32_1 = arith.constant 0 : i32
    return %arg0, %c0_i32, %c0_i32_0 : i32, i32, i32
  }
  func.func @transform_2(%arg0: i32) -> (i32, i32) {
    %c0_i32 = arith.constant 0 : i32
    %c0_i32_0 = arith.constant 0 : i32
    %c0_i32_1 = arith.constant 0 : i32
    return %c0_i32, %c0_i32_0 : i32, i32
  }
  func.func @transform_3(%arg0: i32) -> (i32, i32) {
    %c0_i32 = arith.constant 0 : i32
    %c0_i32_0 = arith.constant 0 : i32
    %c0_i32_1 = arith.constant 0 : i32
    return %c0_i32, %c0_i32_0 : i32, i32
  }
  func.func @transform_4(%arg0: i32) -> (i32, i32, i32) {
    %c0_i32 = arith.constant 0 : i32
    %c0_i32_0 = arith.constant 0 : i32
    %c0_i32_1 = arith.constant 0 : i32
    return %arg0, %c0_i32, %c0_i32_0 : i32, i32, i32
  }
}

</mosaic_0001>

<bundles_post_ra>
// kernel: tpu_custom_call.1
= control target key start
LH: loop header
LB: loop body
LE: loop exit
PB: predicated region body
PF: predicated region fallthrough
CT: control target
= control target key end

     0   :  { %s962_s0 = inlined_call_operand.hbm [shape: f32[2,8,32], index: 0, kind: input, shape index: {}]   ;;  %s963_s1 = inlined_call_operand.hbm [shape: f32[2,8,32], index: 1, kind: input, shape index: {}]   ;;  %s964_s2 = inlined_call_operand.hbm [shape: f32[8,32], index: 2, kind: input, shape index: {}]   ;;  %s965_s3 = inlined_call_operand.hbm [shape: f32[8,32], index: 3, kind: input, shape index: {}]   ;;  %s966_s4 = inlined_call_operand.hbm [shape: f32[2,8,32], index: 4, kind: output, shape index: {}]  }
   0x1   :  { %967 = sst [smem:[#allocation17_spill]] %s964_s2 }
   0x2   :  { %968 = sst [smem:[#allocation18_spill]] %s965_s3 }
   0x3   :  { %9 = vsyncpa [#allocation3], 0 }
   0x4   :  { %11 = vsyncpa [#allocation3 + $0x1], 0 }
   0x5   :  { %12 = vsyncpa [#allocation6], 0 }
   0x6   :  { %14 = vsyncpa [#allocation6 + $0x1], 0 }
   0x7   :  { %15 = vsyncpa [#allocation9], 0 }
   0x8   :  { %16 = vsyncpa [#allocation4], 0 }
   0x9   :  { %18 = vsyncpa [#allocation4 + $0x1], 0  ;;  %s782_s15 = smov 0   ;;  %s784_s16 = smov 0  }
   0xa   :  { %s786_s17 = smov 0   ;;  %s788_s18 = smov 0  }
   0xb LB: > { %s803_s19 = sadd.s32 4294967295, %s753_s18   ;;  %s458_s20 = sadd.s32 4294967294, %s753_s18   ;;  %s753_s18 = sphi %s788_s18, %s982_s18   ;;  %s749_s17 = sphi %s786_s17, %s981_s17   ;;  %s745_s16 = sphi %s784_s16, %s980_s16   ;;  %s741_s15 = sphi %s782_s15, %s979_s15  }
   0xc   : > { %p44_p0 = scmp.ne.s32.totalorder %s745_s16, %s741_s15  ;;  %p45_p1 = scmp.eq.s32.totalorder %s803_s19, 0 }
   0xd   : > { %p136_p2 = scmp.eq.s32.totalorder %s803_s19, 1  ;;  %p142_p3 = scmp.eq.s32.totalorder %s458_s20, 1 }
   0xe   : > { %p812_p4 = por %p45_p1, %p44_p0  ;;  %p459_p5 = scmp.ge.s32.totalorder %s753_s18, 1 }
   0xf   : > { %p817_p6 = por %p142_p3, %p44_p0  ;;  %p149_p7 = scmp.lt.s32.totalorder %s753_s18, 3 }
  0x10   : > { %s971_s2 = sld [smem:[#allocation17_spill]]  ;;  %s755_s27 = smov [#allocation7]  }
  0x11   : > { %p825_p8 = pnand %p459_p5, %p149_p7  ;;  %s163_s28 = sshll.u32 %s755_s27, 4  ;;  %s164_s28 = int_to_ptr.vmem [resolvable:$true] %s163_s28 }
  0x12   : > { %s973_s3 = sld [smem:[#allocation18_spill]]  ;;  %s756_s6 = smov [#allocation8]  }
  0x13   : > { %p495_p10 = pneg %p825_p8  ;;  %s175_s7 = sshll.u32 %s756_s6, 4  ;;  %s176_s7 = int_to_ptr.vmem [resolvable:$true] %s175_s7 }
  0x14   : > { %s838_s8 = sadd.s32 1, %s753_s18   ;;  %s31_s9 = sadd.s32 1, %s749_s17 }
  0x15   : > { %p496_p11 = pnand %p495_p10, %p45_p1  ;;  %s28_s10 = ssub.s32 %s753_s18, %s838_s8 }
  0x16   : > { %s161_s25 = sshll.u32 %s971_s2, 4  ;;  %p38_p12 = scmp.ne.s32.totalorder %s749_s17, %s745_s16  ;;  %s162_s25 = int_to_ptr.hbm [resolvable:$true] %s161_s25 }
  0x17   : > { %498 = dma.hbm_to_vmem [thread:$0]  (!%p496_p11), %s162_s25, 128, %s164_s28, [#allocation6]  }
  0x18   : > { %s173_s5 = sshll.u32 %s973_s3, 4  ;;  %p29_p13 = scmp.eq.s32.totalorder %s28_s10, 0  ;;  %s174_s5 = int_to_ptr.hbm [resolvable:$true] %s173_s5 }
  0x19   : > { %501 = dma.hbm_to_vmem [thread:$0]  (!%p496_p11), %s174_s5, 128, %s176_s7, [#allocation9]  }
  0x1a   : > { %p39_p0 = scmp.eq.s32.totalorder %s753_s18, 0  ;;  %p848_p3 = por %p136_p2, %p38_p12 }
  0x1b   : > { %p515_p5 = scmp.lt.s32.totalorder %s753_s18, 2  ;;  %s186_s13 = sand.u32 1, %s749_s17  }
  0x1c   : > { %s854_s12 = scalar_select %p29_p13, %s749_s17, %s31_s9  }
  0x1d   : > { %p40_p7 = por %p39_p0, %p38_p12  ;;  %s857_s14 = sshll.u32 %s186_s13, 3 }
  0x1e   : > { %975 = sst [smem:[#allocation16_spill]] %s854_s12  ;;  %s464_s20 = sshll.u32 %s753_s18, 3 }
  0x1f   : > { %s194_s25 = scalar_lea.hbm %s962_s0, %s464_s20  ;;  %s190_s27 = scalar_lea.vmem [#allocation2], %s857_s14 }
  0x20   : > { %s198_s28 = sshll.u32 %s190_s27, 4  ;;  %s196_s29 = sshll.u32 %s194_s25, 4  ;;  %s199_s28 = int_to_ptr.vmem [resolvable:$true] %s198_s28  ;;  %s197_s29 = int_to_ptr.hbm [resolvable:$true] %s196_s29 }
  0x21   : > { %p864_p2 = pnand %p515_p5, %p40_p7  ;;  %s213_s7 = scalar_lea.hbm %s963_s1, %s464_s20 }
  0x22   : > { %s205_s9 = sand.u32 1, %s753_s18   ;;  %s187_s10 = scalar_lea.sflag [#allocation3], %s186_s13 }
  0x23   : > { %s615_s2 = sshra.s32 %s197_s29, 4  ;;  %p619_p11 = pneg %p864_p2  ;;  %s616_s2 = int_to_ptr.hbm [resolvable:$true] %s615_s2 }
  0x24   : > { %s617_s23 = scalar_lea.hbm %s616_s2, 8  ;;  %s622_s27 = scalar_lea.hbm %s962_s0, 16 }
  0x25   : > { %p618_p10 = scmp.ne.s32.totalorder %s616_s2, %s617_s23  ;;  %p623_p0 = scmp.lt.s32.totalorder %s616_s2, %s962_s0 }
  0x26   : > { %p624_p5 = scmp.lt.s32.totalorder %s622_s27, %s617_s23 }
  0x27   : > { %p620_p12 = pnand %p619_p11, %p618_p10 }
  0x28   : > { %p625_p7 = por %p624_p5, %p623_p0 }
  0x29   : > { %p621_p13 = pneg %p620_p12 }
  0x2b   : > { %p626_p9 = pnand %p625_p7, %p621_p13 }
  0x2d   : > { %629 = shalt.err (!%p626_p9)
}
  0x2e   : > { %505 = dma.hbm_to_vmem [thread:$0]  (!%p864_p2), %s197_s29, 128, %s199_s28, %s187_s10  }
  0x2f   : > { %s215_s13 = sshll.u32 %s213_s7, 4  ;;  %s209_s20 = scalar_lea.vmem [#allocation5], %s857_s14  ;;  %s216_s13 = int_to_ptr.hbm [resolvable:$true] %s215_s13 }
  0x30   : > { %s217_s3 = sshll.u32 %s209_s20, 4  ;;  %s206_s24 = scalar_lea.sflag [#allocation6], %s205_s9  ;;  %s218_s3 = int_to_ptr.vmem [resolvable:$true] %s217_s3 }
  0x31   : > { %s645_s25 = sshra.s32 %s216_s13, 4  ;;  %s652_s27 = scalar_lea.hbm %s963_s1, 16  ;;  %s646_s25 = int_to_ptr.hbm [resolvable:$true] %s645_s25 }
  0x32   : > { %s647_s12 = scalar_lea.hbm %s646_s25, 8  ;;  %p653_p9 = scmp.lt.s32.totalorder %s646_s25, %s963_s1 }
  0x33   : > { %p648_p10 = scmp.ne.s32.totalorder %s646_s25, %s647_s12  ;;  %p654_p0 = scmp.lt.s32.totalorder %s652_s27, %s647_s12 }
  0x35   : > { %p650_p12 = pnand %p648_p10, %p619_p11  ;;  %p655_p5 = por %p654_p0, %p653_p9 }
  0x37   : > { %p651_p13 = pneg %p650_p12 }
  0x39   : > { %p656_p7 = pnand %p655_p5, %p651_p13 }
  0x3b   : > { %659 = shalt.err (!%p656_p7)
}
  0x3c   : > { %508 = dma.hbm_to_vmem [thread:$0]  (!%p864_p2), %s216_s13, 128, %s218_s3, %s206_s24  }
  0x3d   : > { %226 = sbr.rel (%p825_p8) target bundleno = 474 (0x1da), region = 36  ;;  %s900_s14 = sand.u32 (!%p825_p8), 1, %s745_s16  }
  0x3e   : > { %s903_s29 = sshll.u32 (!%p825_p8), %s900_s14, 3  ;;  %s229_s7 = scalar_lea.sflag (!%p825_p8), [#allocation3], %s900_s14 }
  0x3f   : > { %s232_s12 = scalar_lea.vmem (!%p825_p8), [#allocation2], %s903_s29 }
  0x42   : > { %720 = dma.done.wait (%p812_p4), %s229_s7, 128  }
  0x43   : > { %722 = vsyncadd (%p812_p4), %s229_s7, 4294967168  ;;  %s238_s3 = sand.u32 1, %s803_s19   ;;  %s242_s30 = scalar_lea.vmem [#allocation5], %s903_s29 }
  0x44   : > { %s239_s26 = scalar_lea.sflag [#allocation6], %s238_s3 }
  0x45   : > { %724 = dma.done.wait (%p812_p4), %s239_s26, 128  }
  0x46   : > { %726 = vsyncadd (%p812_p4), %s239_s26, 4294967168 }
  0x47   : > { %728 = dma.done.wait (%p45_p1), [#allocation6], 128  }
  0x48   : > { %730 = vsyncadd (%p45_p1), [#allocation6], 4294967168 }
  0x49   : > { %732 = dma.done.wait (%p45_p1), [#allocation9], 128  }
  0x4a   : > { %734 = vsyncadd (%p45_p1), [#allocation9], 4294967168  ;;  %v283_v0 = vld [vmem:[%s232_s12] sm:$0xff]  ;;  %v284_v1 = vld [vmem:[%s242_s30] sm:$0xff]  ;;  %vm286_vm0 = vcmask 261120   ;;  %s474_s10 = sshll.u32 %s803_s19, 3 }
  0x4b   : > { %v285_v2 = vadd.f32 %v284_v1, %v283_v0  ;;  %s341_s20 = scalar_lea.hbm %s966_s4, %s474_s10  ;;  %v324_v33 = vld [vmem:[#allocation7] sm:$0xff]  ;;  %v325_v35 = vld [vmem:[#allocation8] sm:$0xff]  ;;  %s282_s24 = scalar_lea.vmem [#allocation10], %s903_s29 }
  0x4c   : > { %s343_s25 = sshll.u32 %s282_s24, 4  ;;  %s345_s2 = sshll.u32 %s341_s20, 4  ;;  %s344_s25 = int_to_ptr.vmem [resolvable:$true] %s343_s25  ;;  %s346_s2 = int_to_ptr.hbm [resolvable:$true] %s345_s2 }
  0x4d   : > { %v287_v3 = vsel %vm286_vm0, %v285_v2, 0.0  ;;  %s331_s19 = scalar_lea.sflag [#allocation4], %s900_s14  ;;  %s689_s23 = sshra.s32 %s346_s2, 4  ;;  %s690_s23 = int_to_ptr.hbm [resolvable:$true] %s689_s23 }
  0x4e   : > { %288 = vadd.xlane.f32.xlu0 %v287_v3  ;;  %s691_s27 = scalar_lea.hbm %s690_s23, 8  ;;  %s695_s29 = scalar_lea.hbm %s966_s4, 16 }
  0x4f   : > { %p692_p1 = scmp.ne.s32.totalorder %s690_s23, %s691_s27  ;;  %p696_p2 = scmp.lt.s32.totalorder %s690_s23, %s966_s4 }
  0x50   : > { %p697_p11 = scmp.lt.s32.totalorder %s695_s29, %s691_s27 }
  0x51   : > { %p693_p4 = pnand %p692_p1, %p848_p3 }
  0x52   : > { %p698_p10 = por %p697_p11, %p696_p2 }
  0x53   : > { %p694_p8 = pneg %p693_p4 }
  0x55   : > { %p699_p12 = pnand %p698_p10, %p694_p8 }
  0xc1   : > { %v289_v4 = vpop.xlane.xlu0 %288 }
  0xc2   : > { %v290_v5 = vrot.slane %v289_v4, 4 }
  0xc4   : > { %v291_v6 = vadd.f32 %v290_v5, %v289_v4 }
  0xc6   : > { %v292_v7 = vrot.slane %v291_v6, 2 }
  0xc8   : > { %v293_v8 = vadd.f32 %v292_v7, %v291_v6 }
  0xca   : > { %v294_v9 = vrot.slane %v293_v8, 1 }
  0xcc   : > { %v295_v10 = vadd.f32 %v294_v9, %v293_v8 }
  0xce   : > { %477 = vpush %v295_v10 }
  0xff   : > { %s478_s21 = spop %477 }
 0x100   : > { %v297_v11 = vstv %s478_s21 }
 0x101   : > { %v298_v12 = vmul.f32 0.00390625, %v297_v11 }
 0x103   : > { %v299_v13 = vsub.f32 %v285_v2, %v298_v12 }
 0x105   : > { %v300_v14 = vmul.f32 %v299_v13, %v299_v13 }
 0x107   : > { %v301_v15 = vsel %vm286_vm0, %v300_v14, 0.0 }
 0x108   : > { %302 = vadd.xlane.f32.xlu0 %v301_v15 }
 0x17b   : > { %v303_v16 = vpop.xlane.xlu0 %302 }
 0x17c   : > { %v304_v17 = vrot.slane %v303_v16, 4 }
 0x17e   : > { %v305_v18 = vadd.f32 %v304_v17, %v303_v16 }
 0x180   : > { %v306_v19 = vrot.slane %v305_v18, 2 }
 0x182   : > { %v307_v20 = vadd.f32 %v306_v19, %v305_v18 }
 0x184   : > { %v308_v21 = vrot.slane %v307_v20, 1 }
 0x186   : > { %v309_v22 = vadd.f32 %v308_v21, %v307_v20 }
 0x188   : > { %479 = vpush %v309_v22 }
 0x1b9   : > { %s480_s9 = spop %479 }
 0x1ba   : > { %v311_v23 = vstv %s480_s9 }
 0x1bb   : > { %v312_v24 = vmul.f32 0.00390625, %v311_v23 }
 0x1bd   : > { %v313_v25 = vadd.f32 1e-05, %v312_v24 }
 0x1bf   : > { %553 = vrsqrt.f32 %v313_v25  ;;  %vm320_vm2 = vweird.f32 %v313_v25 }
 0x1c5   : > { %v554_v26 = vpop.eup %553 }
 0x1c6   : > { %v315_v27 = vmul.f32 %v554_v26, %v313_v25  ;;  %vm321_vm1 = vweird.f32 %v554_v26 }
 0x1c7   : > { %vm322_vm3 = vmor %vm320_vm2, %vm321_vm1 }
 0x1c8   : > { %v316_v28 = vmul.f32 %v554_v26, %v315_v27 }
 0x1ca   : > { %v317_v29 = vmul.f32 0.5, %v316_v28 }
 0x1cc   : > { %v318_v30 = vsub.f32 1.5, %v317_v29 }
 0x1ce   : > { %v319_v31 = vmul.f32 %v554_v26, %v318_v30 }
 0x1d0   : > { %v323_v32 = vsel %vm322_vm3, %v554_v26, %v319_v31 }
 0x1d1   : > { %v326_v34 = vmul.f32 %v323_v32, %v299_v13 }
 0x1d3   : > { %v327_v36 = vmul.f32 %v326_v34, %v324_v33 }
 0x1d5   : > { %v328_v37 = vadd.f32 %v327_v36, %v325_v35 }
 0x1d7   : > { %329 = vst.msk [vmem:[%s282_s24] sm:$0xff] %vm286_vm0, %v328_v37 }
 0x1d8   : > { %702 = shalt.err (!%p699_p12)
}
 0x1d9   : > { %493 = dma.vmem_to_hbm [thread:$0]  (%p848_p3), %s344_s25, 128, %s346_s2, %s331_s19  }
 0x1da PF: > { %s357_s14 = sand.u32 1, %s741_s15   ;;  %p977_p13 = scmp.ge.s32.totalorder %s753_s18, 2 }
 0x1db   : > { %s358_s3 = scalar_lea.sflag [#allocation4], %s357_s14 }
 0x1dc   : > { %p510_p9 = pnand %p977_p13, %p817_p6 }
 0x1de   : > { %p511_p0 = pneg %p510_p9 }
 0x1e0   : > { %736 = dma.done.wait (%p511_p0), %s358_s3, 128  }
 0x1e1   : > { %738 = vsyncadd (%p511_p0), %s358_s3, 4294967168  ;;  %s978_s26 = sld [smem:[#allocation16_spill]]  ;;  %p21_p5 = scmp.ge.s32.totalorder %s838_s8, 4  }
 0x1e2   : > { %s979_s15 = smov %s745_s16  ;;  %s980_s16 = smov %s749_s17 }
 0x1e3   : > { %s982_s18 = smov %s838_s8  ;;  %23 = sbr.rel (!%p21_p5) target bundleno = 11 (0xb), region = 102 }
 0x1e7   : > { %s981_s17 = smov %s978_s26 }
 0x1e8   :  { %364 = vsyncpa [#allocation3], 1 }
 0x1e9   :  { %366 = vsyncpa [#allocation3 + $0x1], 1 }
 0x1ea   :  { %367 = vsyncpa [#allocation6], 1 }
 0x1eb   :  { %369 = vsyncpa [#allocation6 + $0x1], 1 }
 0x1ec   :  { %370 = vsyncpa [#allocation9], 1 }
 0x1ed   :  { %371 = vsyncpa [#allocation4], 1 }
 0x1ee   :  { %373 = vsyncpa [#allocation4 + $0x1], 1 }

</bundles_post_ra>
